<compile_context>
chip_gen: v6e
topology: v6e:2x2x1
jax: 0.10.0
libtpu: 0.0.40
codegen_flags: <defaults>
</compile_context>

<pallas_src>
import functools

import jax
import jax.numpy as jnp
from jax.experimental import pallas as pl
from jax.experimental.pallas import tpu as pltpu


def se_block_kernel(x_ref, w1_ref, b1_ref, w2_ref, b2_ref, o_ref, *, inv_hw):
    # x_ref / o_ref: (TB, C, HW) in the input dtype.

    # Squeeze: global average pool over the spatial (lane) axis.  Accumulate in
    # float32 and divide by the true H*W.  The tile load is consumed by the
    # reduction immediately, so it does not stay live across the MLP below.
    pooled = jnp.sum(x_ref[...], axis=2, dtype=jnp.float32) * inv_hw       # (TB, C)

    # Excitation MLP (tiny; off the HBM critical path; all gate math in f32).
    h = jnp.dot(pooled, w1_ref[...],
                preferred_element_type=jnp.float32) + b1_ref[...]          # (TB, Ch)
    h = jnp.maximum(h, 0.0)
    s = jnp.dot(h, w2_ref[...],
                preferred_element_type=jnp.float32) + b2_ref[...]          # (TB, C)
    s = jax.nn.sigmoid(s)

    # Scale: re-read the already VMEM-resident tile (cheap vld slots) instead of
    # carrying the full tile as one SSA value across the MLP; cast only the tiny
    # gate to the tile dtype.
    o_ref[...] = x_ref[...] * s[:, :, None].astype(o_ref.dtype)


def _tpu_params():
    """Generation-aware VMEM capacity and a multi-TensorCore-per-chip flag."""
    vmem_capacity = 64 << 20          # conservative default (fits v7x's 64 MiB)
    try:
        info = pltpu.get_tpu_info()
        vmem_capacity = int(getattr(info, "vmem_capacity_bytes", vmem_capacity))
    except Exception:
        pass
    multi_core = False
    try:
        kind = jax.devices()[0].device_kind.lower()
        multi_core = any(t in kind for t in ("v4", "v5p", "v7"))
    except Exception:
        pass
    return vmem_capacity, multi_core


def _pick_batch_tile(B, bytes_per_batch, *, max_tile_bytes, target_tile_bytes,
                     min_grid):
    """Pick TB (a divisor of B): smallest tile reaching the DMA target (or the
    largest fitting the VMEM budget), keeping grid extent >= min_grid (2 only
    on multi-TensorCore chips so both cores get grid steps)."""
    best = 1
    for tb in range(1, B + 1):
        if B % tb:
            continue
        if tb > 1 and tb * bytes_per_batch > max_tile_bytes:
            continue
        if tb > 1 and (B // tb) < min_grid:
            continue
        best = tb
        if tb * bytes_per_batch >= target_tile_bytes:
            break
    return best


def se_block(x, w1, b1, w2, b2):
    """x: (B, C, H, W) NCHW.  w1: (C, C//r), b1: (C//r,), w2: (C//r, C), b2: (C,).

    Weights are stored as (in, out), i.e. torch Linear weight.T.
    """
    B, C, H, W = x.shape
    HW = H * W
    Ch = w1.shape[1]
    itemsize = jnp.dtype(x.dtype).itemsize

    # No spatial padding: the block covers the full (C, HW) extent per batch
    # element (block dims equal to full array dims satisfy the (8,128) rule),
    # so ragged HW becomes masked stores instead of extra full-tensor HBM
    # passes for pad + slice outside the kernel.
    x_flat = x.reshape(B, C, HW)
    b1_2d = b1.reshape(1, Ch)
    b2_2d = b2.reshape(1, C)

    weight_bytes = int((w1.size + b1.size + w2.size + b2.size)
                       * jnp.dtype(w1.dtype).itemsize)

    # One generation-aware budget drives both TB and vmem_limit_bytes
    # (v7x: 64 MiB VMEM -> ~48 MiB budget; v5e/v6e: 128 MiB -> 96 MiB budget).
    vmem_capacity, multi_core = _tpu_params()
    vmem_budget = min(int(vmem_capacity * 3 // 4), 96 << 20)
    bytes_per_batch = C * HW * itemsize
    max_tile_bytes = max((vmem_budget - weight_bytes - (2 << 20)) // 4,
                         bytes_per_batch)
    TB = _pick_batch_tile(B, bytes_per_batch,
                          max_tile_bytes=max_tile_bytes,
                          target_tile_bytes=2 << 20,
                          min_grid=2 if multi_core else 1)
    grid_b = B // TB
    tile_bytes = TB * bytes_per_batch

    # Double-buffered input + output tiles, single-buffered resident weights,
    # plus slack; never declare more than the chip physically has.
    needed = 4 * tile_bytes + weight_bytes + (4 << 20)
    vmem_limit = int(min(max(needed, 32 << 20), vmem_capacity - (8 << 20)))
    # NOTE: if a single batch element's tile ever exceeds this budget (huge
    # C*H*W), a two-pass pool-then-scale split over HW tiles would be needed;
    # not required for typical SE shapes.

    # Advisory cost: memory-bound (x read once, written once, weights once —
    # they are resident via the constant index_map).
    cost = pl.CostEstimate(
        flops=int(2 * B * C * HW + 4 * B * C * Ch),
        transcendentals=int(B * C),
        bytes_accessed=int(2 * B * C * HW * itemsize + weight_bytes),
    )

    kernel = functools.partial(se_block_kernel, inv_hw=float(1.0 / HW))

    out_flat = pl.pallas_call(
        kernel,
        out_shape=jax.ShapeDtypeStruct((B, C, HW), x.dtype),
        grid_spec=pltpu.PrefetchScalarGridSpec(
            num_scalar_prefetch=0,
            grid=(grid_b,),
            in_specs=[
                pl.BlockSpec((TB, C, HW), lambda b: (b, 0, 0)),   # x batch-tile
                pl.BlockSpec((C, Ch), lambda b: (0, 0)),          # w1 (resident)
                pl.BlockSpec((1, Ch), lambda b: (0, 0)),          # b1
                pl.BlockSpec((Ch, C), lambda b: (0, 0)),          # w2 (resident)
                pl.BlockSpec((1, C), lambda b: (0, 0)),           # b2
            ],
            out_specs=pl.BlockSpec((TB, C, HW), lambda b: (b, 0, 0)),
        ),
        compiler_params=pltpu.CompilerParams(
            dimension_semantics=("parallel",),
            vmem_limit_bytes=vmem_limit,
        ),
        cost_estimate=cost,
    )(x_flat, w1, b1_2d, w2, b2_2d)

    return out_flat.reshape(B, C, H, W)


def se_block_reference(x, w1, b1, w2, b2):
    """Pure-JAX reference matching the PyTorch SEBlock.forward semantics."""
    pooled = jnp.mean(x, axis=(2, 3))                    # (B, C)
    h = jnp.maximum(pooled @ w1 + b1, 0.0)               # (B, C//r)
    s = jax.nn.sigmoid(h @ w2 + b2)                      # (B, C)
    return x * s[:, :, None, None]


if __name__ == "__main__":
    # Shapes consistent with SEBlock(channels=64, r=16): hidden = 64 // 16 = 4.
    B, C, H, W = 2, 64, 16, 16
    r = 16
    Ch = C // r

    key = jax.random.PRNGKey(0)
    kx, k1, k2, k3, k4 = jax.random.split(key, 5)

    x = jax.random.normal(kx, (B, C, H, W), dtype=jnp.float32)
    # Deterministic parameter init (stored as (in, out) == torch weight.T).
    w1 = jax.random.normal(k1, (C, Ch), dtype=jnp.float32) * 0.1
    b1 = jax.random.normal(k2, (Ch,), dtype=jnp.float32) * 0.1
    w2 = jax.random.normal(k3, (Ch, C), dtype=jnp.float32) * 0.1
    b2 = jax.random.normal(k4, (C,), dtype=jnp.float32) * 0.1

    out = jax.block_until_ready(se_block(x, w1, b1, w2, b2))

    ref = se_block_reference(x, w1, b1, w2, b2)
    assert out.shape == (B, C, H, W)
    assert jnp.allclose(out, ref, atol=1e-5, rtol=1e-5), "mismatch vs reference"

    print("KERNEL_OK")
</pallas_src>

<mosaic_0001>
module attributes {stable_mosaic.version = 11 : i64} {
  func.func @se_block_kernel(%arg0: i32, %arg1: memref<2x64x256xf32, #tpu.memory_space<vmem>>, %arg2: memref<64x4xf32, #tpu.memory_space<vmem>>, %arg3: memref<1x4xf32, #tpu.memory_space<vmem>>, %arg4: memref<4x64xf32, #tpu.memory_space<vmem>>, %arg5: memref<1x64xf32, #tpu.memory_space<vmem>>, %arg6: memref<2x64x256xf32, #tpu.memory_space<vmem>>) attributes {dimension_semantics = [#tpu.dimension_semantics<parallel>], iteration_bounds = array<i64: 1>, scalar_prefetch = 0 : i64, scratch_operands = 0 : i64, tpu.core_type = #tpu.core_type<tc>, window_params = [{transform_indices = @transform_0, window_bounds = array<i64: 2, 64, 256>}, {pipeline_mode = #tpu.pipeline_mode<synchronous>, transform_indices = @transform_1, window_bounds = array<i64: 64, 4>}, {pipeline_mode = #tpu.pipeline_mode<synchronous>, transform_indices = @transform_2, window_bounds = array<i64: 1, 4>}, {pipeline_mode = #tpu.pipeline_mode<synchronous>, transform_indices = @transform_3, window_bounds = array<i64: 4, 64>}, {pipeline_mode = #tpu.pipeline_mode<synchronous>, transform_indices = @transform_4, window_bounds = array<i64: 1, 64>}, {transform_indices = @transform_5, window_bounds = array<i64: 2, 64, 256>}]} {
    %c0 = arith.constant 0 : index
    %c0_0 = arith.constant 0 : index
    %c0_1 = arith.constant 0 : index
    %0 = vector.load %arg1[%c0, %c0_0, %c0_1] : memref<2x64x256xf32, #tpu.memory_space<vmem>>, vector<2x64x256xf32>
    %cst = arith.constant dense<0.000000e+00> : vector<2x64xf32>
    %1 = vector.multi_reduction <add>, %0, %cst [2] : vector<2x64x256xf32> to vector<2x64xf32>
    %cst_2 = arith.constant 3.906250e-03 : f32
    %2 = vector.broadcast %cst_2 : f32 to vector<2x64xf32>
    %3 = arith.mulf %1, %2 : vector<2x64xf32>
    %c0_3 = arith.constant 0 : index
    %c0_4 = arith.constant 0 : index
    %4 = vector.load %arg2[%c0_3, %c0_4] : memref<64x4xf32, #tpu.memory_space<vmem>>, vector<64x4xf32>
    %cst_5 = arith.constant dense<0.000000e+00> : vector<2x4xf32>
    %5 = tpu.matmul %3, %4, %cst_5 {dimension_numbers = #tpu.dot_dimension_numbers<[1], [0], [0], [1], [0, 0, 1, 1], [], []>} : vector<2x64xf32>, vector<64x4xf32>, vector<2x4xf32> -> vector<2x4xf32>
    %c0_6 = arith.constant 0 : index
    %c0_7 = arith.constant 0 : index
    %6 = vector.load %arg3[%c0_6, %c0_7] : memref<1x4xf32, #tpu.memory_space<vmem>>, vector<1x4xf32>
    %7 = vector.broadcast %6 : vector<1x4xf32> to vector<2x4xf32>
    %8 = arith.addf %5, %7 : vector<2x4xf32>
    %cst_8 = arith.constant 0.000000e+00 : f32
    %9 = vector.broadcast %cst_8 : f32 to vector<2x4xf32>
    %10 = arith.maximumf %8, %9 : vector<2x4xf32>
    %c0_9 = arith.constant 0 : index
    %c0_10 = arith.constant 0 : index
    %11 = vector.load %arg4[%c0_9, %c0_10] : memref<4x64xf32, #tpu.memory_space<vmem>>, vector<4x64xf32>
    %cst_11 = arith.constant dense<0.000000e+00> : vector<2x64xf32>
    %12 = tpu.matmul %10, %11, %cst_11 {dimension_numbers = #tpu.dot_dimension_numbers<[1], [0], [0], [1], [0, 0, 1, 1], [], []>} : vector<2x4xf32>, vector<4x64xf32>, vector<2x64xf32> -> vector<2x64xf32>
    %c0_12 = arith.constant 0 : index
    %c0_13 = arith.constant 0 : index
    %13 = vector.load %arg5[%c0_12, %c0_13] : memref<1x64xf32, #tpu.memory_space<vmem>>, vector<1x64xf32>
    %14 = vector.broadcast %13 : vector<1x64xf32> to vector<2x64xf32>
    %15 = arith.addf %12, %14 : vector<2x64xf32>
    %16 = arith.negf %15 : vector<2x64xf32>
    %17 = math.exp %16 : vector<2x64xf32>
    %cst_14 = arith.constant 1.000000e+00 : f32
    %18 = vector.broadcast %cst_14 : f32 to vector<2x64xf32>
    %19 = arith.addf %18, %17 : vector<2x64xf32>
    %20 = arith.divf %18, %19 : vector<2x64xf32>
    %c0_15 = arith.constant 0 : index
    %c0_16 = arith.constant 0 : index
    %c0_17 = arith.constant 0 : index
    %21 = vector.load %arg1[%c0_15, %c0_16, %c0_17] : memref<2x64x256xf32, #tpu.memory_space<vmem>>, vector<2x64x256xf32>
    %22 = vector.shape_cast %20 : vector<2x64xf32> to vector<2x64x1xf32>
    %23 = vector.broadcast %22 : vector<2x64x1xf32> to vector<2x64x256xf32>
    %24 = arith.mulf %21, %23 : vector<2x64x256xf32>
    %c0_18 = arith.constant 0 : index
    %c0_19 = arith.constant 0 : index
    %c0_20 = arith.constant 0 : index
    %25 = vector.load %arg6[%c0_18, %c0_19, %c0_20] : memref<2x64x256xf32, #tpu.memory_space<vmem>>, vector<2x64x256xf32>
    tpu.vector_store %arg6[%c0_18, %c0_19, %c0_20], %24 {strides = array<i32>} : memref<2x64x256xf32, #tpu.memory_space<vmem>>, vector<2x64x256xf32>,
    return
  }
  func.func @transform_0(%arg0: i32) -> (i32, i32, i32) {
    %c0_i32 = arith.constant 0 : i32
    %c0_i32_0 = arith.constant 0 : i32
    %c0_i32_1 = arith.constant 0 : i32
    return %arg0, %c0_i32, %c0_i32_0 : i32, i32, i32
  }
  func.func @transform_1(%arg0: i32) -> (i32, i32) {
    %c0_i32 = arith.constant 0 : i32
    %c0_i32_0 = arith.constant 0 : i32
    %c0_i32_1 = arith.constant 0 : i32
    return %c0_i32, %c0_i32_0 : i32, i32
  }
  func.func @transform_2(%arg0: i32) -> (i32, i32) {
    %c0_i32 = arith.constant 0 : i32
    %c0_i32_0 = arith.constant 0 : i32
    %c0_i32_1 = arith.constant 0 : i32
    return %c0_i32, %c0_i32_0 : i32, i32
  }
  func.func @transform_3(%arg0: i32) -> (i32, i32) {
    %c0_i32 = arith.constant 0 : i32
    %c0_i32_0 = arith.constant 0 : i32
    %c0_i32_1 = arith.constant 0 : i32
    return %c0_i32, %c0_i32_0 : i32, i32
  }
  func.func @transform_4(%arg0: i32) -> (i32, i32) {
    %c0_i32 = arith.constant 0 : i32
    %c0_i32_0 = arith.constant 0 : i32
    %c0_i32_1 = arith.constant 0 : i32
    return %c0_i32, %c0_i32_0 : i32, i32
  }
  func.func @transform_5(%arg0: i32) -> (i32, i32, i32) {
    %c0_i32 = arith.constant 0 : i32
    %c0_i32_0 = arith.constant 0 : i32
    %c0_i32_1 = arith.constant 0 : i32
    return %arg0, %c0_i32, %c0_i32_0 : i32, i32, i32
  }
}

</mosaic_0001>

<bundles_post_ra>
// kernel: tpu_custom_call.1
= control target key start
LH: loop header
LB: loop body
LE: loop exit
PB: predicated region body
PF: predicated region fallthrough
CT: control target
= control target key end

     0   :  { %10 = vsyncpa [#allocation3], 0  ;;  %s903_s0 = inlined_call_operand.hbm [shape: f32[2,64,256], index: 0, kind: input, shape index: {}]   ;;  %s904_s1 = inlined_call_operand.vmem [shape: f32[64,4], index: 1, kind: input, shape index: {}]   ;;  %s905_s2 = inlined_call_operand.vmem [shape: f32[1,4], index: 2, kind: input, shape index: {}]   ;;  %s906_s3 = inlined_call_operand.vmem [shape: f32[4,64], index: 3, kind: input, shape index: {}]   ;;  %s907_s4 = inlined_call_operand.vmem [shape: f32[1,64], index: 4, kind: input, shape index: {}]   ;;  %s908_s5 = inlined_call_operand.hbm [shape: f32[2,64,256], index: 5, kind: output, shape index: {}]  }
   0x1   :  { %11 = vsyncpa [#allocation4], 0  ;;  %s670_s18 = smov [#allocation2]  }
   0x2   :  { %s17_s19 = sshll.u32 %s670_s18, 4  ;;  %s18_s19 = int_to_ptr.vmem [resolvable:$true] %s17_s19 }
   0x3   :  { %s634_s20 = scalar_lea.vmem %s18_s19, 4096  ;;  %p639_p1 = scmp.lt.s32.totalorder %s18_s19, %s18_s19 }
   0x4   :  { %p635_p0 = scmp.ne.s32.totalorder %s18_s19, %s634_s20  ;;  %p640_p2 = scmp.lt.s32.totalorder %s634_s20, %s634_s20 }
   0x6   :  { %p641_p3 = por %p640_p2, %p639_p1 }
   0x8   :  { %p642_p4 = pnand %p641_p3, %p635_p0 }
   0xa   :  { %645 = shalt.err (!%p642_p4)
}
   0xb   :  { %s671_s21 = smov 256   ;;  %s672_s22 = smov 16  }
   0xc   :  { %23 = dma.hbm_to_vmem [thread:$0]  %s903_s0, 4096, %s18_s19, [#allocation3], %s671_s21, %s671_s21, %s672_s22  }
   0xd   :  { %666 = dma.done.wait [#allocation3], 4096  }
   0xe   :  { %667 = vsyncadd [#allocation3], 4294963200  ;;  %v712_v0 = vld [vmem:[#allocation2 + $0x80] sm:$0xff]  ;;  %v714_v1 = vld [vmem:[#allocation2 + $0x88] sm:$0xff]  ;;  %v673_v48 = vmov 0.0   ;;  %vm674_vm0 = vmmov 0   ;;  %v162_v61 = vlaneseq }
   0xf   :  { %v716_v2 = vld [vmem:[#allocation2] sm:$0xff]  ;;  %v91_v3 = vadd.f32 %v714_v1, %v712_v0  ;;  %v720_v4 = vld [vmem:[#allocation2 + $0x8] sm:$0xff]  ;;  %v722_v5 = vld [vmem:[#allocation2 + $0x90] sm:$0xff]  ;;  %592 = vmatprep.subr.mxu0 %v673_v48  ;;  %611 = vmatprep.subr.mxu1 %v673_v48  ;;  %vm173_vm1 = vcmask 130112   ;;  %vm180_vm2 = vcmask 195712   ;;  %vm187_vm3 = vcmask 261312  }
  0x10   :  { %v724_v6 = vld [vmem:[#allocation2 + $0x98] sm:$0xff]  ;;  %v67_v7 = vadd.f32 %v720_v4, %v716_v2  ;;  %v728_v8 = vld [vmem:[#allocation2 + $0x10] sm:$0xff]  ;;  %v736_v12 = vld [vmem:[#allocation2 + $0xa0] sm:$0xff]  ;;  %608 = vmatprep.mubr.msk.f32.mxu0 %vm674_vm0, %v673_v48  ;;  %613 = vmatprep.mubr.msk.f32.mxu1 %vm674_vm0, %v673_v48  ;;  %vm194_vm4 = vcmask 326912   ;;  %vm201_vm5 = vcmask 392512   ;;  %vm208_vm6 = vcmask 458112  }
  0x11   :  { %v730_v9 = vld [vmem:[#allocation2 + $0x18] sm:$0xff]  ;;  %92 = vadd.xlane.f32.xlu1 %v91_v3  ;;  %v94_v10 = vadd.f32 %v724_v6, %v722_v5  ;;  %v738_v13 = vld [vmem:[#allocation2 + $0xa8] sm:$0xff]  ;;  %v740_v14 = vld [vmem:[#allocation2 + $0x20] sm:$0xff]  ;;  %v163_v3 = vand.u32 127, %v162_v61  ;;  %vm215_vm7 = vcmask 523712   ;;  %vm256_vm8 = vcmask 1041409  }
  0x12   :  { %68 = vadd.xlane.f32.xlu0 %v67_v7  ;;  %v70_v11 = vadd.f32 %v730_v9, %v728_v8  ;;  %v742_v15 = vld [vmem:[#allocation2 + $0x28] sm:$0xff]  ;;  %v97_v16 = vadd.f32 %v738_v13, %v736_v12  ;;  %v748_v18 = vld [vmem:[#allocation2 + $0xb0] sm:$0xff]  ;;  %v750_v19 = vld [vmem:[#allocation2 + $0xb8] sm:$0xff]  ;;  %vm258_vm9 = vcmask 523264   ;;  %vm344_vm10 = vcmask 1043456  }
  0x13   :  { %v73_v17 = vadd.f32 %v742_v15, %v740_v14  ;;  %916 = vst [vmem:[#allocation8_spill] sm:$0xff] %v750_v19  ;;  %v752_v20 = vld [vmem:[#allocation2 + $0x30] sm:$0xff]  ;;  %v754_v21 = vld [vmem:[#allocation2 + $0x38] sm:$0xff]  ;;  %v100_v22 = vadd.f32 %v750_v19, %v748_v18  ;;  %v760_v24 = vld [vmem:[#allocation2 + $0xc0] sm:$0xff]  ;;  %vm340_vm11 = vcmask 31744  }
  0x14   :  { %v76_v23 = vadd.f32 %v754_v21, %v752_v20  ;;  %v762_v25 = vld [vmem:[#allocation2 + $0xc8] sm:$0xff]  ;;  %v764_v26 = vld [vmem:[#allocation2 + $0x40] sm:$0xff]  ;;  %v772_v30 = vld [vmem:[#allocation2 + $0xd0] sm:$0xff] }
  0x15   :  { %95 = vadd.xlane.f32.xlu1 %v94_v10  ;;  %v766_v27 = vld [vmem:[#allocation2 + $0x48] sm:$0xff]  ;;  %v103_v28 = vadd.f32 %v762_v25, %v760_v24  ;;  %917 = vst [vmem:[#allocation9_spill] sm:$0xff] %v772_v30  ;;  %v774_v31 = vld [vmem:[#allocation2 + $0xd8] sm:$0xff]  ;;  %v776_v32 = vld [vmem:[#allocation2 + $0x50] sm:$0xff]  ;;  %v832_v10 = vshrl.u32 %v162_v61, 7 }
  0x16   :  { %71 = vadd.xlane.f32.xlu0 %v70_v11  ;;  %v79_v29 = vadd.f32 %v766_v27, %v764_v26  ;;  %918 = vst [vmem:[#allocation10_spill] sm:$0xff] %v774_v31  ;;  %v778_v33 = vld [vmem:[#allocation2 + $0x58] sm:$0xff]  ;;  %v106_v34 = vadd.f32 %v774_v31, %v772_v30  ;;  %v784_v36 = vld [vmem:[#allocation2 + $0xe0] sm:$0xff]  ;;  %v786_v37 = vld [vmem:[#allocation2 + $0xe8] sm:$0xff] }
  0x17   :  { %v82_v35 = vadd.f32 %v778_v33, %v776_v32  ;;  %919 = vst [vmem:[#allocation11_spill] sm:$0xff] %v784_v36  ;;  %920 = vst [vmem:[#allocation12_spill] sm:$0xff] %v786_v37  ;;  %v788_v38 = vld [vmem:[#allocation2 + $0x60] sm:$0xff]  ;;  %v790_v39 = vld [vmem:[#allocation2 + $0x68] sm:$0xff]  ;;  %v109_v40 = vadd.f32 %v786_v37, %v784_v36 }
  0x18   :  { %v85_v41 = vadd.f32 %v790_v39, %v788_v38  ;;  %v796_v42 = vld [vmem:[#allocation2 + $0xf0] sm:$0xff]  ;;  %v798_v43 = vld [vmem:[#allocation2 + $0xf8] sm:$0xff]  ;;  %v136_v51 = vld [vmem:[%s904_s1 + $0x28] sm:$0xff] }
  0x19   :  { %98 = vadd.xlane.f32.xlu1 %v97_v16  ;;  %921 = vst [vmem:[#allocation13_spill] sm:$0xff] %v796_v42  ;;  %922 = vst [vmem:[#allocation14_spill] sm:$0xff] %v798_v43  ;;  %v800_v44 = vld [vmem:[#allocation2 + $0x70] sm:$0xff]  ;;  %v802_v45 = vld [vmem:[#allocation2 + $0x78] sm:$0xff]  ;;  %v112_v46 = vadd.f32 %v798_v43, %v796_v42  ;;  %v168_v16 = vadd.s32 4294967288, %v163_v3 }
  0x1a   :  { %74 = vadd.xlane.f32.xlu0 %v73_v17  ;;  %v88_v47 = vadd.f32 %v802_v45, %v800_v44  ;;  %v138_v49 = vld [vmem:[%s904_s1 + $0x38] sm:$0xff]  ;;  %v137_v50 = vld [vmem:[%s904_s1 + $0x30] sm:$0xff]  ;;  %v135_v52 = vld [vmem:[%s904_s1 + $0x20] sm:$0xff]  ;;  %v175_v17 = vadd.s32 4294967280, %v163_v3 }
  0x1b   :  { %593 = vmatpush3.msra.mxu0 %v138_v49  ;;  %v134_v53 = vld [vmem:[%s904_s1 + $0x18] sm:$0xff]  ;;  %v133_v54 = vld [vmem:[%s904_s1 + $0x10] sm:$0xff]  ;;  %v132_v55 = vld [vmem:[%s904_s1 + $0x8] sm:$0xff] }
  0x1c   :  { %594 = vmatprep.subr.mxu0 %v673_v48  ;;  %v131_v56 = vld [vmem:[%s904_s1] sm:$0xff] }
  0x1d   :  { %101 = vadd.xlane.f32.xlu1 %v100_v22  ;;  %595 = vmatpush3.msra.mxu0 %v137_v50  ;;  %v182_v22 = vadd.s32 4294967272, %v163_v3 }
  0x1e   :  { %77 = vadd.xlane.f32.xlu0 %v76_v23  ;;  %596 = vmatprep.subr.mxu0 %v673_v48  ;;  %v189_v23 = vadd.s32 4294967264, %v163_v3 }
  0x1f   :  { %597 = vmatpush3.msra.mxu0 %v136_v51 }
  0x20   :  { %598 = vmatprep.subr.mxu0 %v673_v48  ;;  %v192_v49 = vsub.s32 %v189_v23, %v832_v10  ;;  %v210_v23 = vadd.s32 4294967240, %v163_v3 }
  0x21   :  { %104 = vadd.xlane.f32.xlu1 %v103_v28  ;;  %599 = vmatpush3.msra.mxu0 %v135_v52 }
  0x22   :  { %80 = vadd.xlane.f32.xlu0 %v79_v29  ;;  %600 = vmatprep.subr.mxu0 %v673_v48  ;;  %v196_v29 = vadd.s32 4294967256, %v163_v3 }
  0x23   :  { %601 = vmatpush3.msra.mxu0 %v134_v53 }
  0x24   :  { %602 = vmatprep.subr.mxu0 %v673_v48  ;;  %v199_v52 = vsub.s32 %v196_v29, %v832_v10 }
  0x25   :  { %107 = vadd.xlane.f32.xlu1 %v106_v34  ;;  %603 = vmatpush3.msra.mxu0 %v133_v54  ;;  %v166_v34 = vsub.s32 %v163_v3, %v832_v10 }
  0x26   :  { %83 = vadd.xlane.f32.xlu0 %v82_v35  ;;  %604 = vmatprep.subr.mxu0 %v673_v48 }
  0x27   :  { %605 = vmatpush3.msra.mxu0 %v132_v55 }
  0x28   :  { %606 = vmatprep.subr.mxu0 %v673_v48  ;;  %v185_v48 = vsub.s32 %v182_v22, %v832_v10 }
  0x29   :  { %110 = vadd.xlane.f32.xlu1 %v109_v40  ;;  %607 = vmatpush3.msra.mxu0 %v131_v56  ;;  %v171_v40 = vsub.s32 %v168_v16, %v832_v10 }
  0x2a   :  { %86 = vadd.xlane.f32.xlu0 %v85_v41  ;;  %v178_v41 = vsub.s32 %v175_v17, %v832_v10 }
  0x2d   :  { %113 = vadd.xlane.f32.xlu1 %v112_v46  ;;  %v203_v46 = vadd.s32 4294967248, %v163_v3  ;;  %v213_v3 = vsub.s32 %v210_v23, %v832_v10  ;;  %v575_v23 = vld [vmem:[%s905_s2] ss:$0 sm:$0xff]  ;;  %s675_s2 = smov [#allocation5]  }
  0x2e   :  { %89 = vadd.xlane.f32.xlu0 %v88_v47 }
  0x9a   :  { %v93_v57 = vpop.xlane.xlu1 %92 }
  0x9b   :  { %v69_v58 = vpop.xlane.xlu0 %68  ;;  %v123_v54 = vmul.f32 0.00390625, %v93_v57 }
  0x9c   :  { %v115_v16 = vmul.f32 0.00390625, %v69_v58 }
  0x9d   :  { %v220_v37 = vrot.slane %v123_v54, %v166_v34 }
  0x9e   :  { %v96_v59 = vpop.xlane.xlu1 %95  ;;  %v167_v19 = vrot.slane %v115_v16, %v166_v34 }
  0x9f   :  { %v72_v60 = vpop.xlane.xlu0 %71  ;;  %v124_v47 = vmul.f32 0.00390625, %v96_v59  ;;  %v206_v59 = vsub.s32 %v203_v46, %v832_v10 }
  0xa0   :  { %v116_v50 = vmul.f32 0.00390625, %v72_v60 }
  0xa1   :  { %v224_v22 = vrot.slane %v124_v47, %v171_v40 }
  0xa2   :  { %v99_v62 = vpop.xlane.xlu1 %98  ;;  %v172_v60 = vrot.slane %v116_v50, %v171_v40 }
  0xa3   :  { %v75_v63 = vpop.xlane.xlu0 %74  ;;  %v125_v51 = vmul.f32 0.00390625, %v99_v62  ;;  %v225_v46 = vsel %vm173_vm1, %v224_v22, %v220_v37  ;;  %v332_v22 = vld [vmem:[%s906_s3] sm:$0xf]  ;;  %s563_s3 = sshll.u32 %s675_s2, 4  ;;  %s564_s3 = int_to_ptr.vmem [resolvable:$true] %s563_s3 }
  0xa4   :  { %v117_v55 = vmul.f32 0.00390625, %v75_v63  ;;  %v174_v40 = vsel %vm173_vm1, %v172_v60, %v167_v19  ;;  %612 = vmatpush3.msk.msra.mxu1 %vm344_vm10, %v332_v22  ;;  %v924_v22 = vld [vmem:[#allocation11_spill] sm:$0xff]  ;;  %p651_p6 = scmp.lt.s32.totalorder %s564_s3, %s564_s3 }
  0xa5   :  { %v229_v62 = vrot.slane %v125_v51, %v178_v41 }
  0xa6   :  { %v102_v7 = vpop.xlane.xlu1 %101  ;;  %v179_v57 = vrot.slane %v117_v55, %v178_v41 }
  0xa7   :  { %v78_v11 = vpop.xlane.xlu0 %77  ;;  %v126_v56 = vmul.f32 0.00390625, %v102_v7  ;;  %v230_v50 = vsel %vm180_vm2, %v229_v62, %v225_v46 }
  0xa8   :  { %v118_v17 = vmul.f32 0.00390625, %v78_v11  ;;  %v181_v54 = vsel %vm180_vm2, %v179_v57, %v174_v40 }
  0xa9   :  { %v234_v63 = vrot.slane %v126_v56, %v185_v48 }
  0xaa   :  { %v105_v28 = vpop.xlane.xlu1 %104  ;;  %v186_v58 = vrot.slane %v118_v17, %v185_v48 }
  0xab   :  { %v81_v35 = vpop.xlane.xlu0 %80  ;;  %v127_v43 = vmul.f32 0.00390625, %v105_v28  ;;  %v235_v34 = vsel %vm187_vm3, %v234_v63, %v230_v50  ;;  %v577_v63 = vld [vmem:[%s907_s4] ss:$0 sm:$0xff]  ;;  %v461_v50 = vsub.s32 1, %v832_v10  ;;  %s646_s4 = scalar_lea.vmem %s564_s3, 4096 }
  0xac   :  { %v119_v42 = vmul.f32 0.00390625, %v81_v35  ;;  %v188_v37 = vsel %vm187_vm3, %v186_v58, %v181_v54  ;;  %p647_p5 = scmp.ne.s32.totalorder %s564_s3, %s646_s4  ;;  %p652_p7 = scmp.lt.s32.totalorder %s646_s4, %s646_s4 }
  0xad   :  { %v239_v11 = vrot.slane %v127_v43, %v192_v49 }
  0xae   :  { %v108_v53 = vpop.xlane.xlu1 %107  ;;  %v193_v47 = vrot.slane %v119_v42, %v192_v49  ;;  %p653_p8 = por %p652_p7, %p651_p6 }
  0xaf   :  { %v84_v61 = vpop.xlane.xlu0 %83  ;;  %v128_v31 = vmul.f32 0.00390625, %v108_v53 }
  0xb0   :  { %v120_v30 = vmul.f32 0.00390625, %v84_v61  ;;  %v195_v19 = vsel %vm194_vm4, %v193_v47, %v188_v37  ;;  %p654_p9 = pnand %p653_p8, %p647_p5 }
  0xb1   :  { %v244_v35 = vrot.slane %v128_v31, %v199_v52  ;;  %v240_v31 = vsel %vm194_vm4, %v239_v11, %v235_v34 }
  0xb2   :  { %v111_v29 = vpop.xlane.xlu1 %110  ;;  %v200_v51 = vrot.slane %v120_v30, %v199_v52 }
  0xb3   :  { %v129_v7 = vmul.f32 0.00390625, %v111_v29  ;;  %v87_v36 = vpop.xlane.xlu0 %86  ;;  %v245_v49 = vsel %vm201_vm5, %v244_v35, %v240_v31  ;;  %v426_v35 = vsub.s32 0, %v832_v10 }
  0xb4   :  { %v121_v28 = vmul.f32 0.00390625, %v87_v36  ;;  %v202_v52 = vsel %vm201_vm5, %v200_v51, %v195_v19 }
  0xb5   :  { %v249_v53 = vrot.slane %v129_v7, %v206_v59 }
  0xb6   :  { %v114_v41 = vpop.xlane.xlu1 %113  ;;  %v207_v48 = vrot.slane %v121_v28, %v206_v59 }
  0xb7   :  { %v130_v43 = vmul.f32 0.00390625, %v114_v41  ;;  %v90_v36 = vpop.xlane.xlu0 %89  ;;  %v250_v55 = vsel %vm208_vm6, %v249_v53, %v245_v49 }
  0xb8   :  { %v122_v42 = vmul.f32 0.00390625, %v90_v36  ;;  %v209_v61 = vsel %vm208_vm6, %v207_v48, %v202_v52 }
  0xb9   :  { %v254_v30 = vrot.slane %v130_v43, %v213_v3 }
  0xba   :  { %v214_v56 = vrot.slane %v122_v42, %v213_v3 }
  0xbb   :  { %v255_v16 = vsel %vm215_vm7, %v254_v30, %v250_v55 }
  0xbc   :  { %v216_v17 = vsel %vm215_vm7, %v214_v56, %v209_v61 }
  0xbd   :  { %v257_v59 = vsel %vm256_vm8, %v255_v16, %v216_v17  ;;  %v923_v17 = vld [vmem:[#allocation8_spill] sm:$0xff] }
  0xbe   :  { %609 = vmatmul.mubr.msk.f32.vlgmr.msra.gmra.mxu0 %vm258_vm9, %v257_v59 }
 0x17e   :  { %v327_v60 = vpop.f32.mrf.mxu0 }
 0x17f   :  { %v328_v62 = vadd.f32 %v575_v23, %v327_v60  ;;  %v925_v60 = vld [vmem:[#allocation12_spill] sm:$0xff] }
 0x180   :  { %v610_v29 = vpop.f32.mrf.mxu0 }
 0x181   :  { %v331_v57 = vmax.f32 %v328_v62, 0.0  ;;  %v927_v62 = vld [vmem:[#allocation10_spill] sm:$0xff] }
 0x183   :  { %614 = vmatmul.mubr.msk.f32.vlgmr.msra.gmra.mxu1 %vm340_vm11, %v331_v57  ;;  %v928_v57 = vld [vmem:[#allocation13_spill] sm:$0xff] }
 0x243   :  { %v414_v7 = vpop.f32.mrf.mxu1 }
 0x244   :  { %v415_v58 = vadd.f32 %v577_v63, %v414_v7  ;;  %v929_v7 = vld [vmem:[#allocation14_spill] sm:$0xff] }
 0x245   :  { %v615_v11 = vpop.f32.mrf.mxu1 }
 0x246   :  { %v580_v28 = vmul.f32 -1.442695, %v415_v58 }
 0x248   :  { %622 = vpow2.f32 %v580_v28 }
 0x255   :  { %v623_v46 = vpop.eup %622 }
 0x256   :  { %v421_v47 = vadd.f32 1.0, %v623_v46 }
 0x258   :  { %624 = vrcp.f32 %v421_v47 }
 0x265   :  { %v625_v3 = vpop.eup %624 }
 0x266   :  { %v427_v40 = vrot.slane %v625_v3, %v426_v35  ;;  %v462_v51 = vrot.slane %v625_v3, %v461_v50 }
 0x268   :  { %433 = vbcast.lane.b32.xlu1 %v427_v40, 264  ;;  %429 = vbcast.lane.b32.xlu0 %v427_v40, 256 }
 0x26c   :  { %437 = vbcast.lane.b32.xlu1 %v427_v40, 272  ;;  %445 = vbcast.lane.b32.xlu0 %v427_v40, 288 }
 0x270   :  { %441 = vbcast.lane.b32.xlu1 %v427_v40, 280  ;;  %453 = vbcast.lane.b32.xlu0 %v427_v40, 304 }
 0x274   :  { %449 = vbcast.lane.b32.xlu1 %v427_v40, 296  ;;  %464 = vbcast.lane.b32.xlu0 %v462_v51, 256 }
 0x278   :  { %457 = vbcast.lane.b32.xlu1 %v427_v40, 312  ;;  %472 = vbcast.lane.b32.xlu0 %v462_v51, 272 }
 0x27c   :  { %468 = vbcast.lane.b32.xlu1 %v462_v51, 264  ;;  %480 = vbcast.lane.b32.xlu0 %v462_v51, 288 }
 0x280   :  { %476 = vbcast.lane.b32.xlu1 %v462_v51, 280  ;;  %488 = vbcast.lane.b32.xlu0 %v462_v51, 304 }
 0x284   :  { %484 = vbcast.lane.b32.xlu1 %v462_v51, 296 }
 0x288   :  { %492 = vbcast.lane.b32.xlu1 %v462_v51, 312 }
 0x2da   :  { %v434_v53 = vpop.permute.xlu1 %433  ;;  %v430_v41 = vpop.permute.xlu0 %429 }
 0x2db   :  { %v496_v54 = vmul.f32 %v434_v53, %v728_v8  ;;  %v497_v34 = vmul.f32 %v434_v53, %v730_v9  ;;  %v494_v10 = vmul.f32 %v430_v41, %v716_v2  ;;  %v495_v48 = vmul.f32 %v430_v41, %v720_v4 }
 0x2dd   :  { %528 = vst [vmem:[#allocation5 + $0x10] sm:$0xff] %v496_v54  ;;  %529 = vst [vmem:[#allocation5 + $0x18] sm:$0xff] %v497_v34 }
 0x2de   :  { %526 = vst [vmem:[#allocation5] sm:$0xff] %v494_v10  ;;  %527 = vst [vmem:[#allocation5 + $0x8] sm:$0xff] %v495_v48  ;;  %v438_v43 = vpop.permute.xlu1 %437  ;;  %v446_v36 = vpop.permute.xlu0 %445 }
 0x2df   :  { %v498_v37 = vmul.f32 %v438_v43, %v740_v14  ;;  %v499_v31 = vmul.f32 %v438_v43, %v742_v15  ;;  %v502_v42 = vmul.f32 %v446_v36, %v764_v26  ;;  %v503_v8 = vmul.f32 %v446_v36, %v766_v27 }
 0x2e1   :  { %530 = vst [vmem:[#allocation5 + $0x20] sm:$0xff] %v498_v37  ;;  %531 = vst [vmem:[#allocation5 + $0x28] sm:$0xff] %v499_v31 }
 0x2e2   :  { %534 = vst [vmem:[#allocation5 + $0x40] sm:$0xff] %v502_v42  ;;  %535 = vst [vmem:[#allocation5 + $0x48] sm:$0xff] %v503_v8  ;;  %v442_v2 = vpop.permute.xlu1 %441  ;;  %v454_v4 = vpop.permute.xlu0 %453 }
 0x2e3   :  { %v500_v9 = vmul.f32 %v442_v2, %v752_v20  ;;  %v501_v19 = vmul.f32 %v442_v2, %v754_v21  ;;  %v506_v49 = vmul.f32 %v454_v4, %v788_v38  ;;  %v507_v14 = vmul.f32 %v454_v4, %v790_v39 }
 0x2e5   :  { %532 = vst [vmem:[#allocation5 + $0x30] sm:$0xff] %v500_v9  ;;  %533 = vst [vmem:[#allocation5 + $0x38] sm:$0xff] %v501_v19 }
 0x2e6   :  { %538 = vst [vmem:[#allocation5 + $0x60] sm:$0xff] %v506_v49  ;;  %539 = vst [vmem:[#allocation5 + $0x68] sm:$0xff] %v507_v14  ;;  %v450_v15 = vpop.permute.xlu1 %449  ;;  %v465_v26 = vpop.permute.xlu0 %464 }
 0x2e7   :  { %v504_v27 = vmul.f32 %v450_v15, %v776_v32  ;;  %v505_v30 = vmul.f32 %v450_v15, %v778_v33  ;;  %v510_v52 = vmul.f32 %v465_v26, %v712_v0  ;;  %v511_v20 = vmul.f32 %v465_v26, %v714_v1 }
 0x2e9   :  { %536 = vst [vmem:[#allocation5 + $0x50] sm:$0xff] %v504_v27  ;;  %537 = vst [vmem:[#allocation5 + $0x58] sm:$0xff] %v505_v30 }
 0x2ea   :  { %542 = vst [vmem:[#allocation5 + $0x80] sm:$0xff] %v510_v52  ;;  %543 = vst [vmem:[#allocation5 + $0x88] sm:$0xff] %v511_v20  ;;  %v458_v21 = vpop.permute.xlu1 %457  ;;  %v473_v38 = vpop.permute.xlu0 %472 }
 0x2eb   :  { %v508_v39 = vmul.f32 %v458_v21, %v800_v44  ;;  %v509_v55 = vmul.f32 %v458_v21, %v802_v45  ;;  %v514_v56 = vmul.f32 %v473_v38, %v736_v12  ;;  %v515_v32 = vmul.f32 %v473_v38, %v738_v13 }
 0x2ed   :  { %540 = vst [vmem:[#allocation5 + $0x70] sm:$0xff] %v508_v39  ;;  %541 = vst [vmem:[#allocation5 + $0x78] sm:$0xff] %v509_v55 }
 0x2ee   :  { %546 = vst [vmem:[#allocation5 + $0xa0] sm:$0xff] %v514_v56  ;;  %547 = vst [vmem:[#allocation5 + $0xa8] sm:$0xff] %v515_v32  ;;  %v469_v0 = vpop.permute.xlu1 %468  ;;  %v481_v1 = vpop.permute.xlu0 %480 }
 0x2ef   :  { %v512_v33 = vmul.f32 %v469_v0, %v722_v5  ;;  %v513_v61 = vmul.f32 %v469_v0, %v724_v6  ;;  %v518_v16 = vmul.f32 %v481_v1, %v760_v24  ;;  %v519_v44 = vmul.f32 %v481_v1, %v762_v25  ;;  %v926_v24 = vld [vmem:[#allocation9_spill] sm:$0xff] }
 0x2f1   :  { %544 = vst [vmem:[#allocation5 + $0x90] sm:$0xff] %v512_v33  ;;  %545 = vst [vmem:[#allocation5 + $0x98] sm:$0xff] %v513_v61 }
 0x2f2   :  { %550 = vst [vmem:[#allocation5 + $0xc0] sm:$0xff] %v518_v16  ;;  %551 = vst [vmem:[#allocation5 + $0xc8] sm:$0xff] %v519_v44  ;;  %v477_v12 = vpop.permute.xlu1 %476  ;;  %v489_v13 = vpop.permute.xlu0 %488 }
 0x2f3   :  { %v516_v45 = vmul.f32 %v477_v12, %v748_v18  ;;  %v517_v59 = vmul.f32 %v477_v12, %v923_v17  ;;  %v522_v23 = vmul.f32 %v489_v13, %v924_v22  ;;  %v523_v5 = vmul.f32 %v489_v13, %v925_v60 }
 0x2f5   :  { %548 = vst [vmem:[#allocation5 + $0xb0] sm:$0xff] %v516_v45  ;;  %549 = vst [vmem:[#allocation5 + $0xb8] sm:$0xff] %v517_v59 }
 0x2f6   :  { %554 = vst [vmem:[#allocation5 + $0xe0] sm:$0xff] %v522_v23  ;;  %555 = vst [vmem:[#allocation5 + $0xe8] sm:$0xff] %v523_v5  ;;  %v485_v6 = vpop.permute.xlu1 %484 }
 0x2f7   :  { %v520_v25 = vmul.f32 %v485_v6, %v926_v24  ;;  %v521_v29 = vmul.f32 %v485_v6, %v927_v62 }
 0x2f9   :  { %552 = vst [vmem:[#allocation5 + $0xd0] sm:$0xff] %v520_v25  ;;  %553 = vst [vmem:[#allocation5 + $0xd8] sm:$0xff] %v521_v29 }
 0x2fa   :  { %v493_v18 = vpop.permute.xlu1 %492 }
 0x2fb   :  { %v524_v63 = vmul.f32 %v493_v18, %v928_v57  ;;  %v525_v58 = vmul.f32 %v493_v18, %v929_v7 }
 0x2fd   :  { %556 = vst [vmem:[#allocation5 + $0xf0] sm:$0xff] %v524_v63  ;;  %557 = vst [vmem:[#allocation5 + $0xf8] sm:$0xff] %v525_v58 }
 0x2fe   :  { %657 = shalt.err (!%p654_p9)
}
 0x2ff   :  { %569 = dma.vmem_to_hbm [thread:$0]  %s564_s3, 4096, %s908_s5, [#allocation4], %s671_s21, %s671_s21, %s672_s22  }
 0x300   :  { %668 = dma.done.wait [#allocation4], 4096  }
 0x301   :  { %669 = vsyncadd [#allocation4], 4294963200 }
 0x302   :  { %573 = vsyncpa [#allocation3], 1 }
 0x303   :  { %574 = vsyncpa [#allocation4], 1 }

</bundles_post_ra>
